<compile_context>
chip_gen: v7x
topology: tpu7x:2x2x1
jax: 0.10.0
libtpu: 0.0.40
codegen_flags: <defaults>
</compile_context>

<pallas_src>
import jax
import jax.numpy as jnp
from jax.experimental import pallas as pl
from jax.experimental.pallas import tpu as pltpu


# ------------------------------ kernels ------------------------------------ #

def _head_kernel(feat_ref, wv_ref, wp_ref, value_ref, policy_ref):
    """No-mask path.  feat: (Tn, C, HW), wv: (C, Dv), wp: (C, 1)."""
    feat = feat_ref[...]                                     # input dtype, no full-block upcast
    wp = wp_ref[...].astype(feat.dtype)                      # (C, 1), tiny

    # Policy head: 1x1 conv C->1 == per-position contraction over C.
    # Multiply in input dtype (bf16 VALU on v6e/v7x), f32 accumulation in the
    # sublane (XLU) reduce.  If profiling on v7x shows this on the critical path,
    # switch to an MXU contraction (einsum 'nch,co->noh') -- left as-is per review.
    pol = jnp.sum(feat * wp[None, :, :], axis=1, dtype=jnp.float32)   # (Tn, HW)
    policy_ref[...] = pol.astype(policy_ref.dtype)

    # Value head: global average pool over HW (lane-axis reduce, f32 accum),
    # then a tiny (Tn, C) @ (C, Dv) matmul.
    pooled = jnp.mean(feat, axis=2, dtype=jnp.float32)       # (Tn, C)
    value = jnp.dot(pooled, wv_ref[...].astype(jnp.float32),
                    preferred_element_type=jnp.float32)      # (Tn, Dv)
    value_ref[...] = value.astype(value_ref.dtype)


def _head_kernel_masked(feat_ref, mask_ref, wv_ref, wp_ref, value_ref, policy_ref):
    """Masked path.  mask: (Tn, 1, HW) (free reshape of PyTorch (N, 1, H, W))."""
    feat = feat_ref[...]                                     # input dtype
    mask = mask_ref[...].astype(feat.dtype)                  # (Tn, 1, HW)
    wp = wp_ref[...].astype(feat.dtype)                      # (C, 1)

    # Policy head (identical to no-mask path).
    pol = jnp.sum(feat * wp[None, :, :], axis=1, dtype=jnp.float32)   # (Tn, HW)
    policy_ref[...] = pol.astype(policy_ref.dtype)

    # Masked mean pool: reciprocal-multiply; approx=True -> EUP slot (free-ish).
    # NOTE: all-zero mask rows give Inf/NaN, matching PyTorch (no clamp); padded
    # rows of a partial last tile may also hit 1/0 but are discarded on writeback.
    mask_sum = jnp.sum(mask, axis=2, dtype=jnp.float32)      # (Tn, 1)
    inv = pl.reciprocal(mask_sum, approx=True)
    pooled = jnp.sum(feat * mask, axis=2, dtype=jnp.float32) * inv    # (Tn, C)

    value = jnp.dot(pooled, wv_ref[...].astype(jnp.float32),
                    preferred_element_type=jnp.float32)      # (Tn, Dv)
    value_ref[...] = value.astype(value_ref.dtype)


# ------------------------------ sizing helpers ------------------------------ #

def _vmem_budgets():
    """Generation-aware (feature_block_budget, vmem_limit_bytes).

    v5e/v6e (128 MiB VMEM): ~12 MiB feature block, 80 MiB scoped limit.
    v7x     ( 64 MiB VMEM): ~ 6 MiB feature block, 44 MiB scoped limit.
    Headroom covers double-buffered inputs plus ~2-3x block of live f32
    intermediates (feat*wp, feat*mask products feeding the reduces).
    """
    try:
        vmem_cap = int(pltpu.get_tpu_info().vmem_capacity_bytes)
    except Exception:
        vmem_cap = 64 * 1024 * 1024          # conservative fallback: v7x-sized
    if vmem_cap >= 100 * 1024 * 1024:        # v5e / v6e
        return 12 * 1024 * 1024, 80 * 1024 * 1024
    return 6 * 1024 * 1024, 44 * 1024 * 1024  # v7x


def _choose_tile_n(n, bytes_per_row, block_budget):
    """Rows per batch tile.

    * multiple of 8 (second-to-last dim of the 2D output blocks) unless == N
    * feature block <= block_budget bytes
    * for N >= 16: at most ceil(N/2) rounded to a multiple of 8, so the grid has
      >= 2 steps and "parallel" shards across both v7x TensorCores; prefer a tile
      that divides N (no padded last block), but never shrink below half the cap
      (keeps per-step ~0.35 us overhead amortized).
    """
    bytes_per_row = max(int(bytes_per_row), 1)
    max_rows = max(8, ((block_budget // bytes_per_row) // 8) * 8)
    if n < 16:
        if n <= 8 or n * bytes_per_row <= block_budget:
            return n                          # single block (block dim == array dim)
        return 8
    cap = min(max_rows, max(8, (((n + 1) // 2) // 8) * 8))
    lo = max(8, ((cap // 2) // 8) * 8)
    for t in range(cap, lo - 1, -8):
        if n % t == 0:
            return t
    return cap


# ------------------------------ wrapper ------------------------------------ #

def output_head_v0(feature_nchw, w_value, w_policy, mask_nchw=None):
    """
    feature_nchw : (N, C, H, W)
    w_value      : (dim_value, C)  -- PyTorch nn.Linear weight layout
    w_policy     : (1, C, 1, 1)    -- PyTorch Conv2d weight layout (ks=1)
    mask_nchw    : optional (N, 1, H, W)

    Returns (value, policy) or (value, policy, mask_squeezed), matching PyTorch.
    """
    N, C, H, W = feature_nchw.shape
    HW = H * W
    Dv = w_value.shape[0]
    dtype = feature_nchw.dtype

    # Free reshapes of contiguous NCHW data -- no extra HBM traffic.
    feat = feature_nchw.reshape(N, C, HW)
    wv = jnp.transpose(w_value, (1, 0))                      # (C, Dv) -- tiny
    wp = w_policy.reshape(C, 1)                              # (C, 1)  -- tiny

    block_budget, vmem_limit = _vmem_budgets()
    tile_n = _choose_tile_n(N, C * HW * dtype.itemsize, block_budget)
    grid = (pl.cdiv(N, tile_n),)

    out_shape = (
        jax.ShapeDtypeStruct((N, Dv), dtype),
        jax.ShapeDtypeStruct((N, HW), dtype),
    )
    out_specs = (
        # Dv=3 stays narrow on purpose -- negligible writeback volume (per review).
        pl.BlockSpec((tile_n, Dv), lambda i: (i, 0)),
        pl.BlockSpec((tile_n, HW), lambda i: (i, 0)),        # lane-dense policy stores
    )
    feat_spec = pl.BlockSpec((tile_n, C, HW), lambda i: (i, 0, 0))
    wv_spec = pl.BlockSpec((C, Dv), lambda i: (0, 0))        # resident across grid steps
    wp_spec = pl.BlockSpec((C, 1), lambda i: (0, 0))         # resident across grid steps

    cparams = pltpu.CompilerParams(
        dimension_semantics=("parallel",),                   # megacore sharding
        vmem_limit_bytes=vmem_limit,
    )

    # Memory-bound cost hint for the outer XLA scheduler.
    masked = mask_nchw is not None
    bytes_accessed = (
        N * C * HW * dtype.itemsize                          # feature read
        + N * HW * dtype.itemsize + N * Dv * dtype.itemsize  # outputs
        + C * Dv * wv.dtype.itemsize + C * wp.dtype.itemsize # weights
        + (N * HW * mask_nchw.dtype.itemsize if masked else 0)
    )
    flops = 2 * N * C * HW + N * C * HW + 2 * N * C * Dv + (2 * N * HW if masked else 0)
    cost = pl.CostEstimate(flops=flops,
                           transcendentals=(N if masked else 0),
                           bytes_accessed=bytes_accessed)

    if not masked:
        value, policy_flat = pl.pallas_call(
            _head_kernel,
            out_shape=out_shape,
            grid_spec=pltpu.PrefetchScalarGridSpec(
                num_scalar_prefetch=0,
                grid=grid,
                in_specs=[feat_spec, wv_spec, wp_spec],
                out_specs=out_specs,
            ),
            compiler_params=cparams,
            cost_estimate=cost,
        )(feat, wv, wp)
        return value, policy_flat.reshape(N, H, W)
    else:
        mask = mask_nchw.reshape(N, 1, HW)                   # free reshape
        mask_spec = pl.BlockSpec((tile_n, 1, HW), lambda i: (i, 0, 0))
        value, policy_flat = pl.pallas_call(
            _head_kernel_masked,
            out_shape=out_shape,
            grid_spec=pltpu.PrefetchScalarGridSpec(
                num_scalar_prefetch=0,
                grid=grid,
                in_specs=[feat_spec, mask_spec, wv_spec, wp_spec],
                out_specs=out_specs,
            ),
            compiler_params=cparams,
            cost_estimate=cost,
        )(feat, mask, wv, wp)
        policy = policy_flat.reshape(N, H, W)
        mask_sq = mask_nchw.reshape(N, H, W)                 # torch.squeeze(mask, 1)
        return value, policy, mask_sq


# ------------------------------ reference / demo ---------------------------- #

def _reference(feature_nchw, w_value, w_policy, mask_nchw=None):
    if mask_nchw is not None:
        ms = jnp.sum(mask_nchw, axis=(2, 3))
        pooled = jnp.sum(feature_nchw * mask_nchw, axis=(2, 3)) / ms
    else:
        pooled = jnp.mean(feature_nchw, axis=(2, 3))                       # (N, C)
    value = pooled @ w_value.T                                             # (N, Dv)
    policy = jnp.einsum("nchw,oc->nohw", feature_nchw, w_policy[:, :, 0, 0])
    policy = policy[:, 0]                                                  # (N, H, W)
    if mask_nchw is not None:
        return value, policy, mask_nchw[:, 0]
    return value, policy


def _check(n, c, h, w, dim_value, key, with_mask):
    k_feat, k_wv, k_wp, k_mask = jax.random.split(key, 4)
    feature = jax.random.normal(k_feat, (n, c, h, w), dtype=jnp.float32)
    w_value = jax.random.normal(k_wv, (dim_value, c), dtype=jnp.float32) * 0.1
    w_policy = jax.random.normal(k_wp, (1, c, 1, 1), dtype=jnp.float32) * 0.1

    if not with_mask:
        value, policy = output_head_v0(feature, w_value, w_policy)
        jax.block_until_ready((value, policy))
        v_ref, p_ref = _reference(feature, w_value, w_policy)
        assert value.shape == (n, dim_value) and policy.shape == (n, h, w)
        assert jnp.allclose(value, v_ref, atol=1e-4, rtol=1e-4)
        assert jnp.allclose(policy, p_ref, atol=1e-4, rtol=1e-4)
    else:
        mask = (jax.random.uniform(k_mask, (n, 1, h, w)) > 0.3).astype(jnp.float32)
        value, policy, mask_sq = output_head_v0(feature, w_value, w_policy, mask)
        jax.block_until_ready((value, policy, mask_sq))
        v_ref, p_ref, m_ref = _reference(feature, w_value, w_policy, mask)
        assert value.shape == (n, dim_value) and policy.shape == (n, h, w)
        assert mask_sq.shape == (n, h, w)
        # looser tolerance on the masked value: pl.reciprocal(approx=True) adds
        # ~1e-4 relative error to the pooled means.
        assert jnp.allclose(value, v_ref, atol=2e-3, rtol=2e-3)
        assert jnp.allclose(policy, p_ref, atol=1e-4, rtol=1e-4)
        assert jnp.allclose(mask_sq, m_ref)


if __name__ == "__main__":
    key = jax.random.PRNGKey(0)
    k0, k1, k2, k3 = jax.random.split(key, 4)

    N, C, H, W = 2, 32, 16, 16          # dim_feature = 32
    DIM_VALUE = 3

    # Small primary shapes (single block, grid=(1,)).
    _check(N, C, H, W, DIM_VALUE, k0, with_mask=False)
    _check(N, C, H, W, DIM_VALUE, k1, with_mask=True)

    # Larger batch to exercise multi-step grid (megacore path) and a partial
    # last batch tile (N=20 -> tile_n=8, grid=(3,)).
    _check(20, C, H, W, DIM_VALUE, k2, with_mask=False)
    _check(20, C, H, W, DIM_VALUE, k3, with_mask=True)

    print("KERNEL_OK")
</pallas_src>

<mosaic_0001>
module attributes {stable_mosaic.version = 11 : i64} {
  func.func @_head_kernel(%arg0: i32, %arg1: memref<2x32x256xf32, #tpu.memory_space<vmem>>, %arg2: memref<32x3xf32, #tpu.memory_space<vmem>>, %arg3: memref<32x1xf32, #tpu.memory_space<vmem>>, %arg4: memref<2x3xf32, #tpu.memory_space<vmem>>, %arg5: memref<2x256xf32, #tpu.memory_space<vmem>>) attributes {dimension_semantics = [#tpu.dimension_semantics<parallel>], iteration_bounds = array<i64: 1>, scalar_prefetch = 0 : i64, scratch_operands = 0 : i64, tpu.core_type = #tpu.core_type<tc>, window_params = [{transform_indices = @transform_0, window_bounds = array<i64: 2, 32, 256>}, {pipeline_mode = #tpu.pipeline_mode<synchronous>, transform_indices = @transform_1, window_bounds = array<i64: 32, 3>}, {pipeline_mode = #tpu.pipeline_mode<synchronous>, transform_indices = @transform_2, window_bounds = array<i64: 32, 1>}, {transform_indices = @transform_3, window_bounds = array<i64: 2, 3>}, {transform_indices = @transform_4, window_bounds = array<i64: 2, 256>}]} {
    %c0 = arith.constant 0 : index
    %c0_0 = arith.constant 0 : index
    %c0_1 = arith.constant 0 : index
    %0 = vector.load %arg1[%c0, %c0_0, %c0_1] : memref<2x32x256xf32, #tpu.memory_space<vmem>>, vector<2x32x256xf32>
    %c0_2 = arith.constant 0 : index
    %c0_3 = arith.constant 0 : index
    %1 = vector.load %arg3[%c0_2, %c0_3] : memref<32x1xf32, #tpu.memory_space<vmem>>, vector<32x1xf32>
    %2 = vector.shape_cast %1 : vector<32x1xf32> to vector<1x32x1xf32>
    %3 = vector.broadcast %2 : vector<1x32x1xf32> to vector<2x32x256xf32>
    %4 = arith.mulf %0, %3 : vector<2x32x256xf32>
    %cst = arith.constant dense<0.000000e+00> : vector<2x256xf32>
    %5 = vector.multi_reduction <add>, %4, %cst [1] : vector<2x32x256xf32> to vector<2x256xf32>
    %c0_4 = arith.constant 0 : index
    %c0_5 = arith.constant 0 : index
    %6 = vector.load %arg5[%c0_4, %c0_5] : memref<2x256xf32, #tpu.memory_space<vmem>>, vector<2x256xf32>
    tpu.vector_store %arg5[%c0_4, %c0_5], %5 {strides = array<i32>} : memref<2x256xf32, #tpu.memory_space<vmem>>, vector<2x256xf32>,
    %cst_6 = arith.constant dense<0.000000e+00> : vector<2x32xf32>
    %7 = vector.multi_reduction <add>, %0, %cst_6 [2] : vector<2x32x256xf32> to vector<2x32xf32>
    %cst_7 = arith.constant 2.560000e+02 : f32
    %8 = vector.broadcast %cst_7 : f32 to vector<2x32xf32>
    %9 = arith.divf %7, %8 : vector<2x32xf32>
    %c0_8 = arith.constant 0 : index
    %c0_9 = arith.constant 0 : index
    %10 = vector.load %arg2[%c0_8, %c0_9] : memref<32x3xf32, #tpu.memory_space<vmem>>, vector<32x3xf32>
    %cst_10 = arith.constant dense<0.000000e+00> : vector<2x3xf32>
    %11 = tpu.matmul %9, %10, %cst_10 {dimension_numbers = #tpu.dot_dimension_numbers<[1], [0], [0], [1], [0, 0, 1, 1], [], []>} : vector<2x32xf32>, vector<32x3xf32>, vector<2x3xf32> -> vector<2x3xf32>
    %c0_11 = arith.constant 0 : index
    %c0_12 = arith.constant 0 : index
    %12 = vector.load %arg4[%c0_11, %c0_12] : memref<2x3xf32, #tpu.memory_space<vmem>>, vector<2x3xf32>
    tpu.vector_store %arg4[%c0_11, %c0_12], %11 {strides = array<i32>} : memref<2x3xf32, #tpu.memory_space<vmem>>, vector<2x3xf32>,
    return
  }
  func.func @transform_0(%arg0: i32) -> (i32, i32, i32) {
    %c0_i32 = arith.constant 0 : i32
    %c0_i32_0 = arith.constant 0 : i32
    %c0_i32_1 = arith.constant 0 : i32
    return %arg0, %c0_i32, %c0_i32_0 : i32, i32, i32
  }
  func.func @transform_1(%arg0: i32) -> (i32, i32) {
    %c0_i32 = arith.constant 0 : i32
    %c0_i32_0 = arith.constant 0 : i32
    %c0_i32_1 = arith.constant 0 : i32
    return %c0_i32, %c0_i32_0 : i32, i32
  }
  func.func @transform_2(%arg0: i32) -> (i32, i32) {
    %c0_i32 = arith.constant 0 : i32
    %c0_i32_0 = arith.constant 0 : i32
    %c0_i32_1 = arith.constant 0 : i32
    return %c0_i32, %c0_i32_0 : i32, i32
  }
  func.func @transform_3(%arg0: i32) -> (i32, i32) {
    %c0_i32 = arith.constant 0 : i32
    %c0_i32_0 = arith.constant 0 : i32
    return %arg0, %c0_i32 : i32, i32
  }
  func.func @transform_4(%arg0: i32) -> (i32, i32) {
    %c0_i32 = arith.constant 0 : i32
    %c0_i32_0 = arith.constant 0 : i32
    return %arg0, %c0_i32 : i32, i32
  }
}

</mosaic_0001>

<bundles_post_ra>
// kernel: tpu_custom_call.1
= control target key start
LH: loop header
LB: loop body
LE: loop exit
PB: predicated region body
PF: predicated region fallthrough
CT: control target
= control target key end

     0   :  { %10 = vsyncpa [#allocation3], 0  ;;  %s630_s0 = inlined_call_operand.hbm [shape: f32[2,32,256], index: 0, kind: input, shape index: {}]   ;;  %s631_s1 = inlined_call_operand.vmem [shape: f32[32,3], index: 1, kind: input, shape index: {}]   ;;  %s632_s2 = inlined_call_operand.vmem [shape: f32[32,1], index: 2, kind: input, shape index: {}]   ;;  %s633_s3 = inlined_call_operand.hbm [shape: f32[2,3], index: 3, kind: output, shape index: {0}]   ;;  %s634_s4 = inlined_call_operand.hbm [shape: f32[2,256], index: 4, kind: output, shape index: {1}]  }
   0x1   :  { %11 = vsyncpa [#allocation4], 0 }
   0x2   :  { %12 = vsyncpa [#allocation7], 0  ;;  %s462_s15 = smov [#allocation2]   ;;  %s390_s19 = scalar_lea.hbm %s630_s0, 2048 }
   0x3   :  { %s18_s16 = sshll.u32 %s462_s15, 4  ;;  %p391_p0 = scmp.ne.s32.totalorder %s630_s0, %s390_s19  ;;  %s19_s16 = int_to_ptr.vmem [resolvable:$true] %s18_s16 }
   0x4   :  { %p394_p1 = scmp.lt.u32.totalorder %s390_s19, %s630_s0 }
   0x6   :  { %p396_p2 = pnand %p394_p1, %p391_p0 }
   0x8   :  { %399 = shalt.err (!%p396_p2)
}
   0x9   :  { %s400_s24 = scalar_lea.vmem %s19_s16, 2048  ;;  %p405_p4 = scmp.lt.s32.totalorder %s19_s16, %s19_s16 }
   0xa   :  { %p401_p3 = scmp.ne.s32.totalorder %s19_s16, %s400_s24  ;;  %p406_p5 = scmp.lt.s32.totalorder %s400_s24, %s400_s24 }
   0xc   :  { %p407_p6 = por %p406_p5, %p405_p4 }
   0xe   :  { %p408_p7 = pnand %p407_p6, %p401_p3 }
  0x10   :  { %411 = shalt.err (!%p408_p7)
}
  0x11   :  { %s463_s25 = smov 256   ;;  %s464_s26 = smov 16  }
  0x12   :  { %24 = dma.hbm_to_vmem [thread:$0]  %s630_s0, 2048, %s19_s16, [#allocation3], %s463_s25, %s463_s25, %s464_s26  }
  0x13   :  { %456 = dma.done.wait [#allocation3], 2048  }
  0x14   :  { %457 = vsyncadd [#allocation3], 4294965248  ;;  %v509_v0 = vld [vmem:[#allocation2 + $0x40] sm:$0xff]  ;;  %v511_v1 = vld [vmem:[#allocation2 + $0x48] sm:$0xff]  ;;  %v465_v27 = vmov 0.0|0.0   ;;  %vm466_vm0 = vmmov 0   ;;  %v132_v37 = vlaneseq }
  0x15   :  { %v513_v2 = vld [vmem:[#allocation2] sm:$0xff]  ;;  %v171_v3 = vadd.f32 %v511_v1, %v509_v0  ;;  %v517_v4 = vld [vmem:[#allocation2 + $0x8] sm:$0xff]  ;;  %v519_v5 = vld [vmem:[#allocation2 + $0x50] sm:$0xff]  ;;  %372 = vmatprep.subr.bf16.mxu0 %v465_v27  ;;  %v467_v31 = vmov 0.0   ;;  %v468_v34 = vmov 0   ;;  %vm215_vm1 = vcmask 130112  }
  0x16   :  { %v521_v6 = vld [vmem:[#allocation2 + $0x58] sm:$0xff]  ;;  %v159_v7 = vadd.f32 %v517_v4, %v513_v2  ;;  %v525_v8 = vld [vmem:[#allocation2 + $0x10] sm:$0xff]  ;;  %v533_v12 = vld [vmem:[#allocation2 + $0x60] sm:$0xff]  ;;  %369 = vmatprep.mubr.msk.f32.mxu0 %vm466_vm0, %v467_v31  ;;  %389 = vset.pattern.permute.xlu1 %v468_v34  ;;  %v205_v39 = vand.u32 127, %v132_v37  ;;  %v581_v44 = vshrl.u32 %v132_v37, 7  ;;  %vm222_vm2 = vcmask 195712  }
  0x17   :  { %v527_v9 = vld [vmem:[#allocation2 + $0x18] sm:$0xff]  ;;  %172 = vadd.xlane.f32.xlu1 %v171_v3  ;;  %v174_v10 = vadd.f32 %v521_v6, %v519_v5  ;;  %v535_v13 = vld [vmem:[#allocation2 + $0x68] sm:$0xff]  ;;  %v537_v14 = vld [vmem:[#allocation2 + $0x20] sm:$0xff]  ;;  %388 = vset.pattern.permute.xlu0 %v468_v34  ;;  %vm229_vm3 = vcmask 261312   ;;  %vm149_vm4 = vcmask 1041409   ;;  %vm251_vm5 = vcmask 261120  }
  0x18   :  { %160 = vadd.xlane.f32.xlu0 %v159_v7  ;;  %v162_v11 = vadd.f32 %v527_v9, %v525_v8  ;;  %v539_v15 = vld [vmem:[#allocation2 + $0x28] sm:$0xff]  ;;  %v177_v16 = vadd.f32 %v535_v13, %v533_v12  ;;  %v545_v18 = vld [vmem:[#allocation2 + $0x70] sm:$0xff]  ;;  %v547_v19 = vld [vmem:[#allocation2 + $0x78] sm:$0xff]  ;;  %v210_v41 = vadd.s32 4294967288, %v205_v39  ;;  %v217_v43 = vadd.s32 4294967280, %v205_v39 }
  0x19   :  { %v165_v17 = vadd.f32 %v539_v15, %v537_v14  ;;  %v549_v20 = vld [vmem:[#allocation2 + $0x30] sm:$0xff]  ;;  %v551_v21 = vld [vmem:[#allocation2 + $0x38] sm:$0xff]  ;;  %v180_v22 = vadd.f32 %v547_v19, %v545_v18  ;;  %v192_v24 = vld [vmem:[%s631_s1] sm:$0xff]  ;;  %v224_v48 = vadd.s32 4294967272, %v205_v39  ;;  %v208_v52 = vsub.s32 %v205_v39, %v581_v44 }
  0x1a   :  { %v168_v23 = vadd.f32 %v551_v21, %v549_v20  ;;  %v193_v25 = vld [vmem:[%s631_s1 + $0x8] sm:$0xff]  ;;  %v194_v28 = vld [vmem:[%s631_s1 + $0x10] sm:$0xff]  ;;  %v195_v29 = vld [vmem:[%s631_s1 + $0x18] sm:$0xff]  ;;  %v213_v46 = vsub.s32 %v210_v41, %v581_v44  ;;  %v220_v50 = vsub.s32 %v217_v43, %v581_v44  ;;  %vm151_vm6 = vcmask 1043459  }
  0x1b   :  { %175 = vadd.xlane.f32.xlu1 %v174_v10  ;;  %v373_v26 = vpack.c.bf16 %v193_v25, %v192_v24  ;;  %v376_v30 = vpack.c.bf16 %v195_v29, %v194_v28  ;;  %v49_v32 = vld [vmem:[%s632_s2 + $0x8] sm:$0xff]  ;;  %v48_v33 = vld [vmem:[%s632_s2] sm:$0xff]  ;;  %v50_v35 = vld [vmem:[%s632_s2 + $0x10] sm:$0xff]  ;;  %v227_v59 = vsub.s32 %v224_v48, %v581_v44  ;;  %vm153_vm7 = vcmask 1045509  }
  0x1c   :  { %163 = vadd.xlane.f32.xlu0 %v162_v11  ;;  %v51_v36 = vld [vmem:[%s632_s2 + $0x18] sm:$0xff]  ;;  %vm155_vm8 = vcmask 1047559   ;;  %s470_s2 = smov [#allocation6]  }
  0x1d   :  { %374 = vmatpush3.bf16.msra.mxu0 %v373_v26  ;;  %s342_s17 = sshll.u32 %s470_s2, 4  ;;  %s343_s17 = int_to_ptr.vmem [resolvable:$true] %s342_s17 }
  0x1e   :  { %375 = vmatprep.subr.bf16.mxu0 %v465_v27  ;;  %s412_s18 = scalar_lea.vmem %s343_s17, 64  ;;  %p417_p9 = scmp.lt.s32.totalorder %s343_s17, %s343_s17 }
  0x1f   :  { %178 = vadd.xlane.f32.xlu1 %v177_v16  ;;  %p413_p8 = scmp.ne.s32.totalorder %s343_s17, %s412_s18  ;;  %p418_p10 = scmp.lt.s32.totalorder %s412_s18, %s412_s18 }
  0x20   :  { %166 = vadd.xlane.f32.xlu0 %v165_v17 }
  0x21   :  { %377 = vmatpush3.bf16.msra.mxu0 %v376_v30  ;;  %p419_p11 = por %p418_p10, %p417_p9 }
  0x23   :  { %181 = vadd.xlane.f32.xlu1 %v180_v22  ;;  %p420_p12 = pnand %p419_p11, %p413_p8 }
  0x24   :  { %169 = vadd.xlane.f32.xlu0 %v168_v23 }
  0x34   :  { %59 = vperm.xlu1 %389, %v49_v32  }
  0x38   :  { %64 = vperm.xlu1 %389, %v50_v35  }
  0x3a   :  { %54 = vperm.xlu0 %388, %v48_v33  }
  0x3c   :  { %69 = vperm.xlu1 %389, %v51_v36  }
  0xa4   :  { %v173_v38 = vpop.xlane.xlu1 %172 }
  0xa5   :  { %v161_v40 = vpop.xlane.xlu0 %160  ;;  %v188_v53 = vmul.f32 0.00390625, %v173_v38 }
  0xa6   :  { %v184_v56 = vmul.f32 0.00390625, %v161_v40 }
  0xa7   :  { %v234_v63 = vrot.slane %v188_v53, %v208_v52 }
  0xa8   :  { %v176_v42 = vpop.xlane.xlu1 %175  ;;  %v209_v11 = vrot.slane %v184_v56, %v208_v52 }
  0xa9   :  { %v164_v45 = vpop.xlane.xlu0 %163  ;;  %v189_v47 = vmul.f32 0.00390625, %v176_v42 }
  0xaa   :  { %v185_v49 = vmul.f32 0.00390625, %v164_v45 }
  0xab   :  { %v238_v58 = vrot.slane %v189_v47, %v213_v46 }
  0xac   :  { %v179_v51 = vpop.xlane.xlu1 %178  ;;  %v214_v60 = vrot.slane %v185_v49, %v213_v46 }
  0xad   :  { %v190_v54 = vmul.f32 0.00390625, %v179_v51  ;;  %v167_v55 = vpop.xlane.xlu0 %166  ;;  %v239_v17 = vsel %vm215_vm1, %v238_v58, %v234_v63 }
  0xae   :  { %v186_v57 = vmul.f32 0.00390625, %v167_v55  ;;  %v216_v23 = vsel %vm215_vm1, %v214_v60, %v209_v11 }
  0xaf   :  { %v243_v61 = vrot.slane %v190_v54, %v220_v50 }
  0xb0   :  { %v182_v62 = vpop.xlane.xlu1 %181  ;;  %v221_v3 = vrot.slane %v186_v57, %v220_v50 }
  0xb1   :  { %v191_v7 = vmul.f32 0.00390625, %v182_v62  ;;  %v170_v10 = vpop.xlane.xlu0 %169  ;;  %v244_v24 = vsel %vm222_vm2, %v243_v61, %v239_v17 }
  0xb2   :  { %v187_v16 = vmul.f32 0.00390625, %v170_v10  ;;  %v223_v26 = vsel %vm222_vm2, %v221_v3, %v216_v23  ;;  %v469_v23 = vmov 1983009808  }
  0xb3   :  { %v248_v22 = vrot.slane %v191_v7, %v227_v59 }
  0xb4   :  { %v228_v25 = vrot.slane %v187_v16, %v227_v59  ;;  %v60_v30 = vpop.permute.xlu1 %59 }
  0xb5   :  { %v249_v27 = vsel %vm229_vm3, %v248_v22, %v244_v24  ;;  %v74_v32 = vmul.f32 %v60_v30, %v525_v8  ;;  %v75_v33 = vmul.f32 %v60_v30, %v527_v9  ;;  %v82_v36 = vmul.f32 %v60_v30, %v519_v5 }
  0xb6   :  { %v230_v28 = vsel %vm229_vm3, %v228_v25, %v223_v26  ;;  %v83_v39 = vmul.f32 %v60_v30, %v521_v6  ;;  %v130_v24 = vunpack.c.l.s4 %v469_v23 }
  0xb7   :  { %v250_v29 = vsel %vm149_vm4, %v249_v27, %v230_v28 }
  0xb8   :  { %370 = vmatmul.mubr.msk.f32.vlgmr.msra.gmra.mrb[0].mxu0 %vm251_vm5, %v250_v29  ;;  %v65_v37 = vpop.permute.xlu1 %64  ;;  %v131_v25 = vunpack.c.0.s8 %v130_v24 }
  0xb9   :  { %v55_v31 = vpop.permute.xlu0 %54  ;;  %v76_v43 = vmul.f32 %v65_v37, %v537_v14  ;;  %v77_v8 = vmul.f32 %v65_v37, %v539_v15  ;;  %v84_v9 = vmul.f32 %v65_v37, %v533_v12 }
  0xba   :  { %v72_v34 = vmul.f32 %v55_v31, %v513_v2  ;;  %v73_v35 = vmul.f32 %v55_v31, %v517_v4  ;;  %v80_v38 = vmul.f32 %v55_v31, %v509_v0  ;;  %v81_v40 = vmul.f32 %v55_v31, %v511_v1 }
  0xbb   :  { %v85_v4 = vmul.f32 %v65_v37, %v535_v13  ;;  %v134_v27 = vsub.s32 %v131_v25, %v581_v44 }
  0xbc   :  { %v88_v41 = vadd.f32 %v74_v32, %v72_v34  ;;  %v97_v42 = vadd.f32 %v75_v33, %v73_v35  ;;  %v106_v2 = vadd.f32 %v82_v36, %v80_v38  ;;  %v115_v45 = vadd.f32 %v83_v39, %v81_v40  ;;  %v70_v5 = vpop.permute.xlu1 %69 }
  0xbd   :  { %v78_v46 = vmul.f32 %v70_v5, %v549_v20  ;;  %v79_v1 = vmul.f32 %v70_v5, %v551_v21  ;;  %v86_v48 = vmul.f32 %v70_v5, %v545_v18  ;;  %v87_v14 = vmul.f32 %v70_v5, %v547_v19 }
  0xbe   :  { %v89_v0 = vadd.f32 %v88_v41, %v76_v43  ;;  %v98_v47 = vadd.f32 %v97_v42, %v77_v8  ;;  %v107_v6 = vadd.f32 %v106_v2, %v84_v9  ;;  %v116_v49 = vadd.f32 %v115_v45, %v85_v4 }
  0xc0   :  { %v90_v15 = vadd.f32 %v89_v0, %v78_v46  ;;  %v99_v50 = vadd.f32 %v98_v47, %v79_v1  ;;  %v108_v12 = vadd.f32 %v107_v6, %v86_v48  ;;  %v117_v51 = vadd.f32 %v116_v49, %v87_v14 }
  0xc2   :  { %v91_v52 = vrot.slane %v90_v15, 4  ;;  %v100_v13 = vrot.slane %v99_v50, 4  ;;  %v109_v53 = vrot.slane %v108_v12, 4  ;;  %v118_v54 = vrot.slane %v117_v51, 4 }
  0xc4   :  { %v92_v55 = vadd.f32 %v91_v52, %v90_v15  ;;  %v101_v20 = vadd.f32 %v100_v13, %v99_v50  ;;  %v110_v56 = vadd.f32 %v109_v53, %v108_v12  ;;  %v119_v57 = vadd.f32 %v118_v54, %v117_v51 }
  0xc6   :  { %v93_v58 = vrot.slane %v92_v55, 2  ;;  %v102_v59 = vrot.slane %v101_v20, 2  ;;  %v111_v21 = vrot.slane %v110_v56, 2  ;;  %v120_v60 = vrot.slane %v119_v57, 2 }
  0xc8   :  { %v94_v18 = vadd.f32 %v93_v58, %v92_v55  ;;  %v103_v61 = vadd.f32 %v102_v59, %v101_v20  ;;  %v112_v19 = vadd.f32 %v111_v21, %v110_v56  ;;  %v121_v62 = vadd.f32 %v120_v60, %v119_v57 }
  0xca   :  { %v95_v63 = vrot.slane %v94_v18, 1  ;;  %v104_v3 = vrot.slane %v103_v61, 1  ;;  %v113_v7 = vrot.slane %v112_v19, 1  ;;  %v122_v10 = vrot.slane %v121_v62, 1 }
  0xcc   :  { %v96_v11 = vadd.f32 %v95_v63, %v94_v18  ;;  %v105_v16 = vadd.f32 %v104_v3, %v103_v61  ;;  %v114_v17 = vadd.f32 %v113_v7, %v112_v19  ;;  %v123_v22 = vadd.f32 %v122_v10, %v121_v62 }
  0xce   :  { %v128_v26 = vcombine.low %v96_v11, %v105_v16  ;;  %v136_v28 = vcombine.low %v114_v17, %v123_v22 }
  0xd0   :  { %v143_v29 = vrot.slane %v136_v28, %v134_v27  ;;  %v135_v30 = vrot.slane %v128_v26, %v134_v27 }
  0xd2   :  { %v148_v31 = vrot.slane %v143_v29, 7 }
  0xd4   :  { %v150_v32 = vsel %vm149_vm4, %v148_v31, %v135_v30 }
  0xd5   :  { %v152_v33 = vsel %vm151_vm6, %v148_v31, %v150_v32 }
  0xd6   :  { %v154_v34 = vsel %vm153_vm7, %v148_v31, %v152_v33 }
  0xd7   :  { %v156_v35 = vsel %vm155_vm8, %v148_v31, %v154_v34 }
  0xd8   :  { %158 = vst [vmem:[#allocation6] sm:$0xf] %v156_v35 }
  0xd9   :  { %423 = shalt.err (!%p420_p12)
}
  0xda   :  { %s424_s21 = scalar_lea.hbm %s634_s4, 64 }
  0xdb   :  { %p425_p13 = scmp.ne.s32.totalorder %s634_s4, %s424_s21  ;;  %p428_p0 = scmp.lt.u32.totalorder %s424_s21, %s634_s4 }
  0xdd   :  { %p430_p1 = pnand %p428_p0, %p425_p13 }
  0xdf   :  { %433 = shalt.err (!%p430_p1)
}
  0xe0   :  { %345 = dma.vmem_to_hbm [thread:$0]  %s343_s17, 64, %s634_s4, [#allocation7]   ;;  %vm324_vm9 = vcmask 17408  }
  0xe1   :  { %s471_s28 = smov [#allocation5]  }
  0xe2   :  { %s332_s0 = sshll.u32 %s471_s28, 4  ;;  %s333_s0 = int_to_ptr.vmem [resolvable:$true] %s332_s0 }
  0xe3   :  { %s434_s29 = scalar_lea.vmem %s333_s0, 32  ;;  %p439_p3 = scmp.lt.s32.totalorder %s333_s0, %s333_s0 }
  0xe4   :  { %p435_p2 = scmp.ne.s32.totalorder %s333_s0, %s434_s29  ;;  %p440_p4 = scmp.lt.s32.totalorder %s434_s29, %s434_s29 }
  0xe6   :  { %p441_p5 = por %p440_p4, %p439_p3 }
  0xe8   :  { %p442_p6 = pnand %p441_p5, %p435_p2 }
 0x18b   :  { %v320_v44 = vpop.f32.mrb[0].mxu0 }
 0x18c   :  { %v371_v36 = vpop.f32.mrb[1].mxu0  ;;  %325 = vst.msk [vmem:[#allocation5] sm:$0x3] %vm324_vm9, %v320_v44 }
 0x18d   :  { %445 = shalt.err (!%p442_p6)
}
 0x18e   :  { %s446_s6 = scalar_lea.hbm %s633_s3, 32 }
 0x18f   :  { %p447_p7 = scmp.ne.s32.totalorder %s633_s3, %s446_s6  ;;  %p450_p8 = scmp.lt.u32.totalorder %s446_s6, %s633_s3 }
 0x191   :  { %p452_p9 = pnand %p450_p8, %p447_p7 }
 0x193   :  { %455 = shalt.err (!%p452_p9)
}
 0x194   :  { %335 = dma.vmem_to_hbm [thread:$0]  %s333_s0, 32, %s633_s3, [#allocation4]  }
 0x195   :  { %458 = dma.done.wait [#allocation4], 32  }
 0x196   :  { %459 = vsyncadd [#allocation4], 4294967264 }
 0x197   :  { %460 = dma.done.wait [#allocation7], 64  }
 0x198   :  { %461 = vsyncadd [#allocation7], 4294967232 }
 0x199   :  { %352 = vsyncpa [#allocation3], 1 }
 0x19a   :  { %353 = vsyncpa [#allocation4], 1 }
 0x19b   :  { %354 = vsyncpa [#allocation7], 1 }

</bundles_post_ra>
